<compile_context>
chip_gen: v6e
topology: v6e:2x2x1
jax: 0.10.0
libtpu: 0.0.40
codegen_flags: <defaults>
</compile_context>

<pallas_src>
import functools

import jax
import jax.numpy as jnp
from jax.experimental import pallas as pl
from jax.experimental.pallas import tpu as pltpu

_LANE = 128
_BF16_SUBLANE = 16  # bf16 tile is (16,128): granule for the bf16 output block


def _round_up(n: int, m: int) -> int:
    return ((n + m - 1) // m) * m


def _motor_cortex_kernel(x_ref, w1_ref, b1_ref, w2_ref, b2_ref, w3_ref, b3_ref,
                         o_ref, *, ach: float):
    cdt = w1_ref.dtype

    # fc1 + ReLU: cast x f32->bf16 in-kernel (VPU), MXU matmul, f32 accumulate.
    x = x_ref[...].astype(cdt)
    h1 = jnp.dot(x, w1_ref[...], preferred_element_type=jnp.float32)
    h1 = jnp.maximum(h1 + b1_ref[...], 0.0)
    # dropout1: identity in eval mode

    # fc2 + ReLU
    h2 = jnp.dot(h1.astype(cdt), w2_ref[...], preferred_element_type=jnp.float32)
    h2 = jnp.maximum(h2 + b2_ref[...], 0.0)
    # dropout2: identity in eval mode

    # fc3
    z = jnp.dot(h2.astype(cdt), w3_ref[...], preferred_element_type=jnp.float32)
    z = z + b3_ref[...]

    # Acetylcholine-gated output nonlinearity (static branch, like PyTorch).
    # Exact identity: 2*sigmoid(z) - 1 == tanh(z/2)  (one EUP op, not two).
    if ach > 0.7:
        out = jnp.tanh(z)
    elif ach > 0.3:
        out = ach * jnp.tanh(z) + (1.0 - ach) * jnp.tanh(0.5 * z)
    else:
        out = jnp.tanh(0.5 * z)

    o_ref[...] = out.astype(o_ref.dtype)


def prepare_params(params, compute_dtype=jnp.bfloat16):
    """Pad hidden/output dims to multiples of 128 and cast matmul operands.

    The input (K) dim of w1 is left unpadded so x can be streamed as-is.
    Zero-padding is numerically exact (padded rows/cols contribute nothing).
    """
    w1, b1 = params["w1"], params["b1"]
    w2, b2 = params["w2"], params["b2"]
    w3, b3 = params["w3"], params["b3"]

    din, h = w1.shape
    h2 = w2.shape[1]
    dout = w3.shape[1]
    h_p = _round_up(h, _LANE)
    h2_p = _round_up(h2, _LANE)
    dout_p = _round_up(dout, _LANE)

    def pad2(a, rows, cols):
        return jnp.pad(a, ((0, rows - a.shape[0]), (0, cols - a.shape[1])))

    return {
        "w1": pad2(w1, din, h_p).astype(compute_dtype),
        "b1": pad2(b1, 1, h_p).astype(jnp.float32),
        "w2": pad2(w2, h_p, h2_p).astype(compute_dtype),
        "b2": pad2(b2, 1, h2_p).astype(jnp.float32),
        "w3": pad2(w3, h2_p, dout_p).astype(compute_dtype),
        "b3": pad2(b3, 1, dout_p).astype(jnp.float32),
        "din": din,
        "dout": dout,
    }


def _pick_batch_tile(batch: int, cap: int) -> int:
    """16-row-granule batch tile; >=2 even tiles for large batches (v7x)."""
    if batch >= 512:
        # Aim for at least two tiles so both v7x TensorCores get work;
        # multiple of 256 keeps MXU rows full on every generation.
        tb = min(cap, _round_up(-(-batch // 2), 256))
    else:
        tb = min(cap, _round_up(batch, _BF16_SUBLANE))
    return max(_BF16_SUBLANE, _round_up(tb, _BF16_SUBLANE))


def motor_cortex_forward(x, prepared, acetylcholine_level: float = 0.5,
                         batch_tile: int = 2048, slice_output: bool = True):
    """x: [B, input_dim] float32 -> [B, output_dim] float32 (module-faithful).

    With slice_output=False the padded bf16 slab [Bp, dout_p] is returned,
    skipping the post-kernel slice/cast pass for consumers that accept it.
    """
    if x.ndim == 1:
        x = x[None, :]
    w1, b1 = prepared["w1"], prepared["b1"]
    w2, b2 = prepared["w2"], prepared["b2"]
    w3, b3 = prepared["w3"], prepared["b3"]
    din, dout = prepared["din"], prepared["dout"]

    B = x.shape[0]
    assert x.shape[1] == din
    h_p = w1.shape[1]
    h2_p = w2.shape[1]
    dout_p = w3.shape[1]

    TB = _pick_batch_tile(B, batch_tile)
    Bp = _round_up(B, TB)
    n_tiles = Bp // TB

    # Only row-pad (often a no-op); no feature pad, no dtype cast in wrapper.
    if Bp != B:
        x = jnp.pad(x, ((0, Bp - B), (0, 0)))

    kernel = functools.partial(_motor_cortex_kernel,
                               ach=float(acetylcholine_level))

    weight_bytes = sum(int(a.size) * a.dtype.itemsize
                       for a in (w1, b1, w2, b2, w3, b3))
    # Per-call VMEM footprint: double-buffered x/out blocks, resident weights,
    # f32 intermediates (h1/h2/z) + headroom; cap at 48 MiB (< v7x 64 MiB/TC).
    vmem_need = (2 * TB * din * 4
                 + 2 * TB * dout_p * 2
                 + weight_bytes
                 + 4 * TB * max(h_p, h2_p, dout_p) * 4)
    vmem_limit = min(48 << 20, max(int(1.5 * vmem_need) + (1 << 20), 16 << 20))

    flops = 2 * Bp * (din * h_p + h_p * h2_p + h2_p * dout_p)
    n_trans = 2 if 0.3 < acetylcholine_level <= 0.7 else 1
    bytes_accessed = int(Bp * din * x.dtype.itemsize
                         + weight_bytes
                         + Bp * dout_p * 2)

    out = pl.pallas_call(
        kernel,
        out_shape=jax.ShapeDtypeStruct((Bp, dout_p), jnp.bfloat16),
        grid_spec=pltpu.PrefetchScalarGridSpec(
            num_scalar_prefetch=0,
            grid=(n_tiles,),
            in_specs=[
                pl.BlockSpec((TB, din), lambda i: (i, 0)),        # x tile (f32, streamed)
                pl.BlockSpec((din, h_p), lambda i: (0, 0)),       # w1 (VMEM-resident)
                pl.BlockSpec((1, h_p), lambda i: (0, 0)),         # b1
                pl.BlockSpec((h_p, h2_p), lambda i: (0, 0)),      # w2
                pl.BlockSpec((1, h2_p), lambda i: (0, 0)),        # b2
                pl.BlockSpec((h2_p, dout_p), lambda i: (0, 0)),   # w3
                pl.BlockSpec((1, dout_p), lambda i: (0, 0)),      # b3
            ],
            out_specs=pl.BlockSpec((TB, dout_p), lambda i: (i, 0)),
        ),
        compiler_params=pltpu.CompilerParams(
            dimension_semantics=("parallel",),
            vmem_limit_bytes=int(vmem_limit)),
        cost_estimate=pl.CostEstimate(
            flops=int(flops),
            transcendentals=int(Bp * dout_p * n_trans),
            bytes_accessed=bytes_accessed),
    )(x, w1, b1, w2, b2, w3, b3)

    if slice_output:
        return out[:B, :dout].astype(jnp.float32)
    return out


def init_params(key, input_dim: int, output_dim: int = 10,
                hidden_dim: int = 128):
    """Deterministic synthetic parameters (shapes match the PyTorch module)."""
    k1, k2, k3, k4, k5, k6 = jax.random.split(key, 6)

    def uniform(k, shape, fan_in):
        bound = 1.0 / jnp.sqrt(jnp.float32(fan_in))
        return jax.random.uniform(k, shape, jnp.float32, -bound, bound)

    h2 = hidden_dim // 2
    return {
        "w1": uniform(k1, (input_dim, hidden_dim), input_dim),
        "b1": uniform(k2, (1, hidden_dim), input_dim),
        "w2": uniform(k3, (hidden_dim, h2), hidden_dim),
        "b2": uniform(k4, (1, h2), hidden_dim),
        "w3": uniform(k5, (h2, output_dim), h2),
        "b3": uniform(k6, (1, output_dim), h2),
    }


def _reference_forward(x, params, ach, compute_dtype=jnp.bfloat16):
    """Pure-JAX reference (same bf16-in / f32-accumulate matmul recipe)."""
    def mm(a, w):
        return jnp.dot(a.astype(compute_dtype), w.astype(compute_dtype),
                       preferred_element_type=jnp.float32)

    h1 = jnp.maximum(mm(x, params["w1"]) + params["b1"], 0.0)
    h2 = jnp.maximum(mm(h1, params["w2"]) + params["b2"], 0.0)
    z = mm(h2, params["w3"]) + params["b3"]
    if ach > 0.7:
        return jnp.tanh(z)
    elif ach > 0.3:
        return ach * jnp.tanh(z) + (1 - ach) * (jax.nn.sigmoid(z) * 2 - 1)
    else:
        return jax.nn.sigmoid(z) * 2 - 1


if __name__ == "__main__":
    key = jax.random.PRNGKey(0)
    kp, kx, kx2 = jax.random.split(key, 3)

    batch, input_dim, output_dim, hidden_dim = 2, 32, 10, 128
    params = init_params(kp, input_dim, output_dim, hidden_dim)
    prepared = prepare_params(params)
    x = jax.random.normal(kx, (batch, input_dim), jnp.float32)

    ok = True

    # Exercise all three acetylcholine branches; check against reference.
    for ach in (0.9, 0.5, 0.2):
        out = motor_cortex_forward(x, prepared, acetylcholine_level=ach)
        out = jax.block_until_ready(out)
        ref = _reference_forward(x, params, ach)
        if out.shape != ref.shape or not jnp.allclose(out, ref,
                                                      atol=5e-3, rtol=5e-3):
            ok = False

    # Exercise row padding + a multi-tile grid (small TB forces 3 tiles).
    x2 = jax.random.normal(kx2, (37, input_dim), jnp.float32)
    out2 = motor_cortex_forward(x2, prepared, acetylcholine_level=0.5,
                                batch_tile=16)
    out2 = jax.block_until_ready(out2)
    ref2 = _reference_forward(x2, params, 0.5)
    if out2.shape != ref2.shape or not jnp.allclose(out2, ref2,
                                                    atol=5e-3, rtol=5e-3):
        ok = False

    if ok:
        print("KERNEL_OK")
</pallas_src>

<mosaic_0001>
module attributes {stable_mosaic.version = 11 : i64} {
  func.func @_motor_cortex_kernel(%arg0: i32, %arg1: memref<16x32xf32, #tpu.memory_space<vmem>>, %arg2: memref<32x128xbf16, #tpu.memory_space<vmem>>, %arg3: memref<1x128xf32, #tpu.memory_space<vmem>>, %arg4: memref<128x128xbf16, #tpu.memory_space<vmem>>, %arg5: memref<1x128xf32, #tpu.memory_space<vmem>>, %arg6: memref<128x128xbf16, #tpu.memory_space<vmem>>, %arg7: memref<1x128xf32, #tpu.memory_space<vmem>>, %arg8: memref<16x128xbf16, #tpu.memory_space<vmem>>) attributes {dimension_semantics = [#tpu.dimension_semantics<parallel>], iteration_bounds = array<i64: 1>, scalar_prefetch = 0 : i64, scratch_operands = 0 : i64, tpu.core_type = #tpu.core_type<tc>, window_params = [{transform_indices = @transform_0, window_bounds = array<i64: 16, 32>}, {pipeline_mode = #tpu.pipeline_mode<synchronous>, transform_indices = @transform_1, window_bounds = array<i64: 32, 128>}, {pipeline_mode = #tpu.pipeline_mode<synchronous>, transform_indices = @transform_2, window_bounds = array<i64: 1, 128>}, {pipeline_mode = #tpu.pipeline_mode<synchronous>, transform_indices = @transform_3, window_bounds = array<i64: 128, 128>}, {pipeline_mode = #tpu.pipeline_mode<synchronous>, transform_indices = @transform_4, window_bounds = array<i64: 1, 128>}, {pipeline_mode = #tpu.pipeline_mode<synchronous>, transform_indices = @transform_5, window_bounds = array<i64: 128, 128>}, {pipeline_mode = #tpu.pipeline_mode<synchronous>, transform_indices = @transform_6, window_bounds = array<i64: 1, 128>}, {transform_indices = @transform_7, window_bounds = array<i64: 16, 128>}]} {
    %c0 = arith.constant 0 : index
    %c0_0 = arith.constant 0 : index
    %0 = vector.load %arg1[%c0, %c0_0] : memref<16x32xf32, #tpu.memory_space<vmem>>, vector<16x32xf32>
    %1 = arith.truncf %0 : vector<16x32xf32> to vector<16x32xbf16>
    %c0_1 = arith.constant 0 : index
    %c0_2 = arith.constant 0 : index
    %2 = vector.load %arg2[%c0_1, %c0_2] : memref<32x128xbf16, #tpu.memory_space<vmem>>, vector<32x128xbf16>
    %cst = arith.constant dense<0.000000e+00> : vector<16x128xf32>
    %3 = tpu.matmul %1, %2, %cst {dimension_numbers = #tpu.dot_dimension_numbers<[1], [0], [0], [1], [0, 0, 1, 1], [], []>} : vector<16x32xbf16>, vector<32x128xbf16>, vector<16x128xf32> -> vector<16x128xf32>
    %c0_3 = arith.constant 0 : index
    %c0_4 = arith.constant 0 : index
    %4 = vector.load %arg3[%c0_3, %c0_4] : memref<1x128xf32, #tpu.memory_space<vmem>>, vector<1x128xf32>
    %5 = vector.broadcast %4 : vector<1x128xf32> to vector<16x128xf32>
    %6 = arith.addf %3, %5 : vector<16x128xf32>
    %cst_5 = arith.constant 0.000000e+00 : f32
    %7 = vector.broadcast %cst_5 : f32 to vector<16x128xf32>
    %8 = arith.maximumf %6, %7 : vector<16x128xf32>
    %9 = arith.truncf %8 : vector<16x128xf32> to vector<16x128xbf16>
    %c0_6 = arith.constant 0 : index
    %c0_7 = arith.constant 0 : index
    %10 = vector.load %arg4[%c0_6, %c0_7] : memref<128x128xbf16, #tpu.memory_space<vmem>>, vector<128x128xbf16>
    %cst_8 = arith.constant dense<0.000000e+00> : vector<16x128xf32>
    %11 = tpu.matmul %9, %10, %cst_8 {dimension_numbers = #tpu.dot_dimension_numbers<[1], [0], [0], [1], [0, 0, 1, 1], [], []>} : vector<16x128xbf16>, vector<128x128xbf16>, vector<16x128xf32> -> vector<16x128xf32>
    %c0_9 = arith.constant 0 : index
    %c0_10 = arith.constant 0 : index
    %12 = vector.load %arg5[%c0_9, %c0_10] : memref<1x128xf32, #tpu.memory_space<vmem>>, vector<1x128xf32>
    %13 = vector.broadcast %12 : vector<1x128xf32> to vector<16x128xf32>
    %14 = arith.addf %11, %13 : vector<16x128xf32>
    %cst_11 = arith.constant 0.000000e+00 : f32
    %15 = vector.broadcast %cst_11 : f32 to vector<16x128xf32>
    %16 = arith.maximumf %14, %15 : vector<16x128xf32>
    %17 = arith.truncf %16 : vector<16x128xf32> to vector<16x128xbf16>
    %c0_12 = arith.constant 0 : index
    %c0_13 = arith.constant 0 : index
    %18 = vector.load %arg6[%c0_12, %c0_13] : memref<128x128xbf16, #tpu.memory_space<vmem>>, vector<128x128xbf16>
    %cst_14 = arith.constant dense<0.000000e+00> : vector<16x128xf32>
    %19 = tpu.matmul %17, %18, %cst_14 {dimension_numbers = #tpu.dot_dimension_numbers<[1], [0], [0], [1], [0, 0, 1, 1], [], []>} : vector<16x128xbf16>, vector<128x128xbf16>, vector<16x128xf32> -> vector<16x128xf32>
    %c0_15 = arith.constant 0 : index
    %c0_16 = arith.constant 0 : index
    %20 = vector.load %arg7[%c0_15, %c0_16] : memref<1x128xf32, #tpu.memory_space<vmem>>, vector<1x128xf32>
    %21 = vector.broadcast %20 : vector<1x128xf32> to vector<16x128xf32>
    %22 = arith.addf %19, %21 : vector<16x128xf32>
    %23 = math.tanh %22 : vector<16x128xf32>
    %24 = arith.truncf %23 : vector<16x128xf32> to vector<16x128xbf16>
    %c0_17 = arith.constant 0 : index
    %c0_18 = arith.constant 0 : index
    %25 = vector.load %arg8[%c0_17, %c0_18] : memref<16x128xbf16, #tpu.memory_space<vmem>>, vector<16x128xbf16>
    tpu.vector_store %arg8[%c0_17, %c0_18], %24 {strides = array<i32>} : memref<16x128xbf16, #tpu.memory_space<vmem>>, vector<16x128xbf16>,
    return
  }
  func.func @transform_0(%arg0: i32) -> (i32, i32) {
    %c0_i32 = arith.constant 0 : i32
    %c0_i32_0 = arith.constant 0 : i32
    return %arg0, %c0_i32 : i32, i32
  }
  func.func @transform_1(%arg0: i32) -> (i32, i32) {
    %c0_i32 = arith.constant 0 : i32
    %c0_i32_0 = arith.constant 0 : i32
    %c0_i32_1 = arith.constant 0 : i32
    return %c0_i32, %c0_i32_0 : i32, i32
  }
  func.func @transform_2(%arg0: i32) -> (i32, i32) {
    %c0_i32 = arith.constant 0 : i32
    %c0_i32_0 = arith.constant 0 : i32
    %c0_i32_1 = arith.constant 0 : i32
    return %c0_i32, %c0_i32_0 : i32, i32
  }
  func.func @transform_3(%arg0: i32) -> (i32, i32) {
    %c0_i32 = arith.constant 0 : i32
    %c0_i32_0 = arith.constant 0 : i32
    %c0_i32_1 = arith.constant 0 : i32
    return %c0_i32, %c0_i32_0 : i32, i32
  }
  func.func @transform_4(%arg0: i32) -> (i32, i32) {
    %c0_i32 = arith.constant 0 : i32
    %c0_i32_0 = arith.constant 0 : i32
    %c0_i32_1 = arith.constant 0 : i32
    return %c0_i32, %c0_i32_0 : i32, i32
  }
  func.func @transform_5(%arg0: i32) -> (i32, i32) {
    %c0_i32 = arith.constant 0 : i32
    %c0_i32_0 = arith.constant 0 : i32
    %c0_i32_1 = arith.constant 0 : i32
    return %c0_i32, %c0_i32_0 : i32, i32
  }
  func.func @transform_6(%arg0: i32) -> (i32, i32) {
    %c0_i32 = arith.constant 0 : i32
    %c0_i32_0 = arith.constant 0 : i32
    %c0_i32_1 = arith.constant 0 : i32
    return %c0_i32, %c0_i32_0 : i32, i32
  }
  func.func @transform_7(%arg0: i32) -> (i32, i32) {
    %c0_i32 = arith.constant 0 : i32
    %c0_i32_0 = arith.constant 0 : i32
    return %arg0, %c0_i32 : i32, i32
  }
}

</mosaic_0001>

<bundles_post_ra>
// kernel: tpu_custom_call.1
= control target key start
LH: loop header
LB: loop body
LE: loop exit
PB: predicated region body
PF: predicated region fallthrough
CT: control target
= control target key end

     0   :  { %12 = vsyncpa [#allocation3], 0  ;;  %s767_s0 = inlined_call_operand.hbm [shape: f32[16,32], index: 0, kind: input, shape index: {}]   ;;  %s768_s1 = inlined_call_operand.hbm [shape: bf16[32,128], index: 1, kind: input, shape index: {}]   ;;  %s769_s2 = inlined_call_operand.vmem [shape: f32[1,128], index: 2, kind: input, shape index: {}]   ;;  %s770_s3 = inlined_call_operand.hbm [shape: bf16[128,128], index: 3, kind: input, shape index: {}]   ;;  %s771_s4 = inlined_call_operand.vmem [shape: f32[1,128], index: 4, kind: input, shape index: {}]   ;;  %s772_s5 = inlined_call_operand.hbm [shape: bf16[128,128], index: 5, kind: input, shape index: {}]   ;;  %s773_s6 = inlined_call_operand.vmem [shape: f32[1,128], index: 6, kind: input, shape index: {}]   ;;  %s774_s7 = inlined_call_operand.hbm [shape: bf16[16,128], index: 7, kind: output, shape index: {}]  }
   0x1   :  { %13 = vsyncpa [#allocation6], 0 }
   0x2   :  { %14 = vsyncpa [#allocation9], 0 }
   0x3   :  { %15 = vsyncpa [#allocation4], 0  ;;  %s656_s24 = smov [#allocation5]  }
   0x4   :  { %s33_s25 = sshll.u32 %s656_s24, 4  ;;  %s34_s25 = int_to_ptr.vmem [resolvable:$true] %s33_s25 }
   0x5   :  { %s556_s26 = scalar_lea.vmem %s34_s25, 256  ;;  %p561_p1 = scmp.lt.s32.totalorder %s34_s25, %s34_s25 }
   0x6   :  { %p557_p0 = scmp.ne.s32.totalorder %s34_s25, %s556_s26  ;;  %p562_p2 = scmp.lt.s32.totalorder %s556_s26, %s556_s26 }
   0x8   :  { %p563_p3 = por %p562_p2, %p561_p1 }
   0xa   :  { %p564_p4 = pnand %p563_p3, %p557_p0 }
   0xc   :  { %567 = shalt.err (!%p564_p4)
}
   0xd   :  { %s657_s27 = smov 64   ;;  %s658_s28 = smov 4  }
   0xe   :  { %39 = dma.hbm_to_vmem [thread:$0]  %s768_s1, 256, %s34_s25, [#allocation6], %s657_s27, %s657_s27, %s658_s28  }
   0xf   :  { %s659_s8 = smov [#allocation2]  }
  0x10   :  { %s21_s9 = sshll.u32 %s659_s8, 4  ;;  %s22_s9 = int_to_ptr.vmem [resolvable:$true] %s21_s9 }
  0x11   :  { %s576_s10 = scalar_lea.vmem %s22_s9, 256  ;;  %p581_p6 = scmp.lt.s32.totalorder %s22_s9, %s22_s9 }
  0x12   :  { %p577_p5 = scmp.ne.s32.totalorder %s22_s9, %s576_s10  ;;  %p582_p7 = scmp.lt.s32.totalorder %s576_s10, %s576_s10 }
  0x14   :  { %p583_p8 = por %p582_p7, %p581_p6 }
  0x16   :  { %p584_p9 = pnand %p583_p8, %p577_p5 }
  0x18   :  { %587 = shalt.err (!%p584_p9)
}
  0x19   :  { %s660_s11 = smov 128   ;;  %s661_s12 = smov 8  }
  0x1a   :  { %27 = dma.hbm_to_vmem [thread:$0]  %s767_s0, 256, %s22_s9, [#allocation3], %s660_s11, %s660_s11, %s661_s12  }
  0x1b   :  { %s662_s15 = smov [#allocation7]   ;;  %s663_s17 = smov [#allocation8]  }
  0x1c   :  { %s47_s16 = sshll.u32 %s662_s15, 4  ;;  %s61_s1 = sshll.u32 %s663_s17, 4  ;;  %s48_s16 = int_to_ptr.vmem [resolvable:$true] %s47_s16  ;;  %s62_s1 = int_to_ptr.vmem [resolvable:$true] %s61_s1 }
  0x1d   :  { %s596_s18 = scalar_lea.vmem %s48_s16, 1024  ;;  %p601_p11 = scmp.lt.s32.totalorder %s48_s16, %s48_s16 }
  0x1e   :  { %p597_p10 = scmp.ne.s32.totalorder %s48_s16, %s596_s18  ;;  %p602_p12 = scmp.lt.s32.totalorder %s596_s18, %s596_s18 }
  0x20   :  { %p603_p13 = por %p602_p12, %p601_p11 }
  0x22   :  { %p604_p0 = pnand %p603_p13, %p597_p10 }
  0x24   :  { %607 = shalt.err (!%p604_p0)
}
  0x25   :  { %53 = dma.hbm_to_vmem [thread:$0]  %s770_s3, 1024, %s48_s16, [#allocation6], %s657_s27, %s657_s27, %s658_s28  }
  0x26   :  { %s616_s0 = scalar_lea.vmem %s62_s1, 1024  ;;  %p621_p2 = scmp.lt.s32.totalorder %s62_s1, %s62_s1 }
  0x27   :  { %p617_p1 = scmp.ne.s32.totalorder %s62_s1, %s616_s0  ;;  %p622_p3 = scmp.lt.s32.totalorder %s616_s0, %s616_s0 }
  0x29   :  { %p623_p4 = por %p622_p3, %p621_p2 }
  0x2b   :  { %p624_p5 = pnand %p623_p4, %p617_p1 }
  0x2d   :  { %627 = shalt.err (!%p624_p5)
}
  0x2e   :  { %67 = dma.hbm_to_vmem [thread:$0]  %s772_s5, 1024, %s62_s1, [#allocation9], %s657_s27, %s657_s27, %s658_s28  }
  0x2f   :  { %648 = dma.done.wait [#allocation3], 256  }
  0x30   :  { %649 = vsyncadd [#allocation3], 4294967040 }
  0x31   :  { %650 = dma.done.wait [#allocation6], 1280  }
  0x32   :  { %651 = vsyncadd [#allocation6], 4294966016 }
  0x33   :  { %652 = dma.done.wait [#allocation9], 1024  }
  0x34   :  { %653 = vsyncadd [#allocation9], 4294966272  ;;  %v664_v0 = vmov 0.0   ;;  %vm665_vm0 = vmmov 0   ;;  %v526_v1 = vld [vmem:[#allocation5 + $0x8] sm:$0xff]   ;;  %v527_v2 = vld [vmem:[#allocation5] sm:$0xff]  }
  0x35   :  { %467 = vmatprep.subr.bf16.mxu0 %v664_v0  ;;  %471 = vmatprep.mubr.msk.bf16.mxu0 %vm665_vm0, %v664_v0  ;;  %v83_v3 = vld [vmem:[#allocation2] sm:$0xff]  ;;  %v84_v4 = vld [vmem:[#allocation2 + $0x8] sm:$0xff]  ;;  %v528_v5 = vld [vmem:[#allocation7 + $0x38] sm:$0xff]   ;;  %vm109_vm1 = vcmask 261120  }
  0x36   :  { %475 = vmatprep.subr.bf16.mxu1 %v664_v0  ;;  %491 = vmatprep.mubr.msk.bf16.mxu1 %vm665_vm0, %v664_v0  ;;  %v85_v6 = vpack.c.bf16 %v84_v4, %v83_v3  ;;  %v529_v7 = vld [vmem:[#allocation7 + $0x30] sm:$0xff]   ;;  %v530_v8 = vld [vmem:[#allocation7 + $0x28] sm:$0xff]   ;;  %v531_v9 = vld [vmem:[#allocation7 + $0x20] sm:$0xff]  }
  0x37   :  { %468 = vmatpush3.bf16.msra.mxu0 %v526_v1  ;;  %476 = vmatpush3.bf16.msra.mxu1 %v528_v5  ;;  %v532_v10 = vld [vmem:[#allocation7 + $0x18] sm:$0xff]   ;;  %v533_v11 = vld [vmem:[#allocation7 + $0x10] sm:$0xff]   ;;  %v534_v12 = vld [vmem:[#allocation7 + $0x8] sm:$0xff]  }
  0x38   :  { %469 = vmatprep.subr.bf16.mxu0 %v664_v0  ;;  %477 = vmatprep.subr.bf16.mxu1 %v664_v0  ;;  %v535_v13 = vld [vmem:[#allocation7] sm:$0xff]   ;;  %v536_v14 = vld [vmem:[#allocation8 + $0x38] sm:$0xff]   ;;  %v537_v15 = vld [vmem:[#allocation8 + $0x30] sm:$0xff]  }
  0x39   :  { %v538_v16 = vld [vmem:[#allocation8 + $0x28] sm:$0xff]   ;;  %v539_v17 = vld [vmem:[#allocation8 + $0x20] sm:$0xff]   ;;  %v540_v18 = vld [vmem:[#allocation8 + $0x18] sm:$0xff]  }
  0x3a   :  { %v415_v19 = vld [vmem:[%s769_s2] ss:$0 sm:$0xff]  ;;  %v541_v29 = vld [vmem:[#allocation8 + $0x10] sm:$0xff]   ;;  %v542_v30 = vld [vmem:[#allocation8 + $0x8] sm:$0xff]  }
  0x3b   :  { %470 = vmatpush3.bf16.msra.mxu0 %v527_v2  ;;  %478 = vmatpush3.bf16.msra.mxu1 %v529_v7  ;;  %v543_v31 = vld [vmem:[#allocation8] sm:$0xff]  }
  0x3c   :  { %495 = vmatprep.subr.bf16.mxu0 %v664_v0  ;;  %479 = vmatprep.subr.bf16.mxu1 %v664_v0  ;;  %v419_v32 = vld [vmem:[%s771_s4] ss:$0 sm:$0xff]  ;;  %s666_s4 = smov [#allocation10]  }
  0x3d   :  { %v428_v42 = vld [vmem:[%s773_s6] ss:$0 sm:$0xff]  ;;  %s401_s26 = sshll.u32 %s666_s4, 4  ;;  %s402_s26 = int_to_ptr.vmem [resolvable:$true] %s401_s26 }
  0x3e   :  { %472 = vmatmul.mubr.msk.bf16.vlgmr.msra.gmra.mxu0 %vm109_vm1, %v85_v6  ;;  %s628_s29 = scalar_lea.vmem %s402_s26, 128  ;;  %p633_p7 = scmp.lt.s32.totalorder %s402_s26, %s402_s26 }
  0x3f   :  { %511 = vmatprep.mubr.msk.bf16.mxu0 %vm665_vm0, %v664_v0  ;;  %480 = vmatpush3.bf16.msra.mxu1 %v530_v8  ;;  %p629_p6 = scmp.ne.s32.totalorder %s402_s26, %s628_s29  ;;  %p634_p8 = scmp.lt.s32.totalorder %s628_s29, %s628_s29 }
  0x40   :  { %481 = vmatprep.subr.bf16.mxu1 %v664_v0  ;;  %496 = vmatpush3.bf16.msra.mxu0 %v536_v14 }
  0x41   :  { %497 = vmatprep.subr.bf16.mxu0 %v664_v0  ;;  %p635_p9 = por %p634_p8, %p633_p7 }
  0x43   :  { %482 = vmatpush3.bf16.msra.mxu1 %v531_v9  ;;  %p636_p10 = pnand %p635_p9, %p629_p6 }
  0x44   :  { %483 = vmatprep.subr.bf16.mxu1 %v664_v0  ;;  %498 = vmatpush3.bf16.msra.mxu0 %v537_v15 }
  0x45   :  { %499 = vmatprep.subr.bf16.mxu0 %v664_v0 }
  0x47   :  { %484 = vmatpush3.bf16.msra.mxu1 %v532_v10 }
  0x48   :  { %485 = vmatprep.subr.bf16.mxu1 %v664_v0  ;;  %500 = vmatpush3.bf16.msra.mxu0 %v538_v16 }
  0x49   :  { %501 = vmatprep.subr.bf16.mxu0 %v664_v0 }
  0x4b   :  { %486 = vmatpush3.bf16.msra.mxu1 %v533_v11 }
  0x4c   :  { %487 = vmatprep.subr.bf16.mxu1 %v664_v0  ;;  %502 = vmatpush3.bf16.msra.mxu0 %v539_v17 }
  0x4d   :  { %503 = vmatprep.subr.bf16.mxu0 %v664_v0 }
  0x4f   :  { %488 = vmatpush3.bf16.msra.mxu1 %v534_v12 }
  0x50   :  { %489 = vmatprep.subr.bf16.mxu1 %v664_v0  ;;  %504 = vmatpush3.bf16.msra.mxu0 %v540_v18 }
  0x51   :  { %505 = vmatprep.subr.bf16.mxu0 %v664_v0 }
  0x53   :  { %490 = vmatpush3.bf16.msra.mxu1 %v535_v13 }
  0x54   :  { %506 = vmatpush3.bf16.msra.mxu0 %v541_v29 }
  0x55   :  { %507 = vmatprep.subr.bf16.mxu0 %v664_v0 }
  0x58   :  { %508 = vmatpush3.bf16.msra.mxu0 %v542_v30 }
  0x59   :  { %509 = vmatprep.subr.bf16.mxu0 %v664_v0 }
  0x5c   :  { %510 = vmatpush3.bf16.msra.mxu0 %v543_v31 }
  0xfe   :  { %v147_v20 = vpop.f32.mrf.mxu0 }
  0xff   :  { %v148_v22 = vadd.f32 %v415_v19, %v147_v20 }
 0x100   :  { %v473_v21 = vpop.f32.mrf.mxu0 }
 0x101   :  { %v154_v26 = vmax.f32 %v148_v22, 0.0 }
 0x102   :  { %v150_v23 = vpop.f32.mrf.mxu0 }
 0x103   :  { %v151_v24 = vadd.f32 %v415_v19, %v150_v23 }
 0x104   :  { %v474_v25 = vpop.f32.mrf.mxu0 }
 0x105   :  { %v155_v27 = vmax.f32 %v151_v24, 0.0 }
 0x107   :  { %v156_v28 = vpack.c.bf16 %v155_v27, %v154_v26 }
 0x109   :  { %492 = vmatmul.mubr.bf16.vlgmr.msra.gmra.mxu1 %v156_v28 }
 0x1c9   :  { %v262_v33 = vpop.f32.mrf.mxu1 }
 0x1ca   :  { %v263_v35 = vadd.f32 %v419_v32, %v262_v33 }
 0x1cb   :  { %v493_v34 = vpop.f32.mrf.mxu1 }
 0x1cc   :  { %v269_v39 = vmax.f32 %v263_v35, 0.0 }
 0x1cd   :  { %v265_v36 = vpop.f32.mrf.mxu1 }
 0x1ce   :  { %v266_v37 = vadd.f32 %v419_v32, %v265_v36 }
 0x1cf   :  { %v494_v38 = vpop.f32.mrf.mxu1 }
 0x1d0   :  { %v270_v40 = vmax.f32 %v266_v37, 0.0 }
 0x1d2   :  { %v271_v41 = vpack.c.bf16 %v270_v40, %v269_v39 }
 0x1d4   :  { %512 = vmatmul.mubr.bf16.vlgmr.msra.gmra.mxu0 %v271_v41 }
 0x294   :  { %v377_v43 = vpop.f32.mrf.mxu0 }
 0x295   :  { %v378_v44 = vadd.f32 %v428_v42, %v377_v43 }
 0x296   :  { %v513_v45 = vpop.f32.mrf.mxu0 }
 0x297   :  { %544 = vtanh.f32 %v378_v44 }
 0x298   :  { %v380_v46 = vpop.f32.mrf.mxu0 }
 0x299   :  { %v381_v47 = vadd.f32 %v428_v42, %v380_v46 }
 0x29a   :  { %v514_v48 = vpop.f32.mrf.mxu0 }
 0x29b   :  { %546 = vtanh.f32 %v381_v47 }
 0x2a4   :  { %v545_v49 = vpop.eup %544 }
 0x2a8   :  { %v547_v50 = vpop.eup %546 }
 0x2a9   :  { %v444_v51 = vpack.c.bf16 %v547_v50, %v545_v49 }
 0x2ab   :  { %445 = vst [vmem:[#allocation10] sm:$0xff] %v444_v51  }
 0x2ac   :  { %639 = shalt.err (!%p636_p10)
}
 0x2ad   :  { %407 = dma.vmem_to_hbm [thread:$0]  %s402_s26, 128, %s774_s7, [#allocation4], %s657_s27, %s657_s27, %s658_s28  }
 0x2ae   :  { %654 = dma.done.wait [#allocation4], 128  }
 0x2af   :  { %655 = vsyncadd [#allocation4], 4294967168 }
 0x2b0   :  { %411 = vsyncpa [#allocation3], 1 }
 0x2b1   :  { %412 = vsyncpa [#allocation6], 1 }
 0x2b2   :  { %413 = vsyncpa [#allocation9], 1 }
 0x2b3   :  { %414 = vsyncpa [#allocation4], 1 }

</bundles_post_ra>
